<compile_context>
chip_gen: v5e
topology: v5e:2x2
jax: 0.10.0
libtpu: 0.0.40
codegen_flags: <defaults>
</compile_context>

<pallas_src>
import functools

import jax
import jax.numpy as jnp
from jax.experimental import pallas as pl
from jax.experimental.pallas import tpu as pltpu

S_PAD = 16    # padded observation width (lane dim of x): S + 1 bias lane <= 16
H_PAD = 128   # padded hidden width (lane dim of h): H + 1 bias lane <= 128
A_PAD = 8     # padded action width (output lane dim): A <= 8


def _round_up(n, m):
    return ((n + m - 1) // m) * m


def agent_kernel(x_ref, p1_ref, p2_ref, o_ref, *, action_size):
    # x_ref:  (TB, S_PAD)    obs in lanes [0, S), 1.0 bias lane at S, zeros after
    # p1_ref: (S_PAD, H_PAD) W1 in [:S, :H], b1 in row S, 1.0 at [S, H]
    #                        (feeds a 1.0 into h[:, H] -> selects fc2's bias row)
    # p2_ref: (H_PAD, A_PAD) W2 in [:H, :A], b2 in row H
    # o_ref:  (TB, A_PAD)    softmax over lanes [0, A), zeros elsewhere
    x = x_ref[...]                                              # (TB, S_PAD)

    # fc1 (+ folded bias via the 1.0 lane) and ReLU.  Lane H of h carries
    # ReLU(1.0) = 1.0 for real rows, which multiplies fc2's bias row below.
    h = jnp.maximum(
        jnp.dot(x, p1_ref[...], preferred_element_type=jnp.float32), 0.0
    )                                                           # (TB, H_PAD)

    # fc2 (+ folded bias) and tanh, computed directly at A_PAD output lanes.
    logits = jnp.tanh(
        jnp.dot(h, p2_ref[...], preferred_element_type=jnp.float32)
    )                                                           # (TB, A_PAD)

    # Softmax over the real action lanes.  logits are post-tanh, bounded in
    # [-1, 1], so the usual max-subtraction is unnecessary: exp cannot
    # overflow.  (If the tanh is ever removed, re-add the max-subtraction.)
    lane = jax.lax.broadcasted_iota(jnp.int32, logits.shape, 1)
    e = jnp.where(lane < action_size, jnp.exp(logits), 0.0)
    denom = jnp.sum(e, axis=-1, keepdims=True)                  # (TB, 1)

    # EUP approximate reciprocal + one Newton step: denom is in
    # [A*exp(-1), A*exp(1)], so one refinement recovers full f32 accuracy.
    r = pl.reciprocal(denom, approx=True)
    r = r * (2.0 - denom * r)

    o_ref[...] = e * r


def make_agent_forward(w1, b1, w2, b2):
    """Pack parameters once and return a jitted forward(x) closed over them.

    w1: (S, H), b1: (H,), w2: (H, A), b2: (A,)   (weights stored as fc.weight.T)
    forward(x): x (S,) -> (A,)   or   x (B, S) -> (B, A)  (softmax per row)
    """
    S, H = w1.shape
    H2, A = w2.shape
    assert H2 == H
    assert S + 1 <= S_PAD and H + 1 <= H_PAD and A <= A_PAD

    # --- one-time parameter packing (hoisted out of the per-call path) -----
    p1 = jnp.zeros((S_PAD, H_PAD), jnp.float32)
    p1 = p1.at[:S, :H].set(jnp.asarray(w1, jnp.float32))
    p1 = p1.at[S, :H].set(jnp.asarray(b1, jnp.float32))
    p1 = p1.at[S, H].set(1.0)            # fc2-bias feeder: h[:, H] = 1.0
    p2 = jnp.zeros((H_PAD, A_PAD), jnp.float32)
    p2 = p2.at[:H, :A].set(jnp.asarray(w2, jnp.float32))
    p2 = p2.at[H, :A].set(jnp.asarray(b2, jnp.float32))
    p1, p2 = jax.device_put(p1), jax.device_put(p2)

    kernel = functools.partial(agent_kernel, action_size=A)

    @jax.jit
    def forward(x):
        squeeze = x.ndim == 1
        xb = x[None, :] if squeeze else x
        B = xb.shape[0]
        assert xb.shape[1] == S

        # Row tile: minimal for tiny batches; for B > 128 keep >= 2 grid tiles
        # (so the "parallel" axis can shard across v7x's 2 TensorCores) and cap
        # at 1024 rows per tile (amortizes the ~0.35 us per-step overhead;
        # VMEM use stays far below every generation's limit).
        B8 = _round_up(B, 8)
        if B8 <= 128:
            TB = B8
        else:
            TB = min(1024, _round_up((B8 + 1) // 2, 128))
        B_pad = _round_up(B, TB)

        # Narrow (16-lane) observation slab with a trailing 1.0 bias lane.
        x_aug = jnp.zeros((B_pad, S_PAD), jnp.float32)
        x_aug = x_aug.at[:B, :S].set(xb.astype(jnp.float32))
        x_aug = x_aug.at[:B, S].set(1.0)

        out = pl.pallas_call(
            kernel,
            out_shape=jax.ShapeDtypeStruct((B_pad, A_PAD), jnp.float32),
            grid=(B_pad // TB,),
            in_specs=[
                pl.BlockSpec((TB, S_PAD), lambda i: (i, 0)),      # batch tile
                pl.BlockSpec((S_PAD, H_PAD), lambda i: (0, 0)),   # resident params
                pl.BlockSpec((H_PAD, A_PAD), lambda i: (0, 0)),   # resident params
            ],
            out_specs=pl.BlockSpec((TB, A_PAD), lambda i: (i, 0)),
            compiler_params=pltpu.CompilerParams(
                dimension_semantics=("parallel",)
            ),
        )(x_aug, p1, p2)

        out = out[:B, :A]
        return out[0] if squeeze else out

    return forward


if __name__ == "__main__":
    # Shapes implied by the module: Simulator(3, 3) -> 9 observation values,
    # window_size = 1, hidden_size = 16, small discrete action space (4).
    space_size, hidden_size, action_size = 9, 16, 4

    key = jax.random.PRNGKey(0)
    kx, kb, k1, k2, k3, k4 = jax.random.split(key, 6)

    # Deterministic synthetic parameters (stored (in, out), i.e. fc.weight.T).
    w1 = jax.random.normal(k1, (space_size, hidden_size), jnp.float32) * 0.5
    b1 = jax.random.normal(k2, (hidden_size,), jnp.float32) * 0.5
    w2 = jax.random.normal(k3, (hidden_size, action_size), jnp.float32) * 0.5
    b2 = jax.random.normal(k4, (action_size,), jnp.float32) * 0.5

    forward = make_agent_forward(w1, b1, w2, b2)   # packs params once

    # 1) single observation — exact Agent.forward semantics
    x1 = jax.random.normal(kx, (space_size,), jnp.float32)
    out1 = jax.block_until_ready(forward(x1))

    # 2) batched observations (rollout-style) — amortizes launch/DMA overhead
    B = 256
    xb = jax.random.normal(kb, (B, space_size), jnp.float32)
    outb = jax.block_until_ready(forward(xb))

    # Pure-JAX reference of the forward semantics.
    def ref_fwd(xin):
        h = jnp.maximum(xin @ w1 + b1, 0.0)
        return jax.nn.softmax(jnp.tanh(h @ w2 + b2), axis=-1)

    ref1 = ref_fwd(x1)
    refb = ref_fwd(xb)

    assert out1.shape == (action_size,)
    assert outb.shape == (B, action_size)
    assert jnp.allclose(out1, ref1, atol=1e-5, rtol=1e-5)
    assert jnp.allclose(outb, refb, atol=1e-5, rtol=1e-5)
    assert jnp.allclose(jnp.sum(out1), 1.0, atol=1e-5)
    assert jnp.allclose(jnp.sum(outb, axis=-1), 1.0, atol=1e-5)

    print("KERNEL_OK")
</pallas_src>

<mosaic_0001>
module attributes {stable_mosaic.version = 11 : i64} {
  func.func @agent_kernel(%arg0: i32, %arg1: memref<8x16xf32, #tpu.memory_space<vmem>>, %arg2: memref<16x128xf32, #tpu.memory_space<vmem>>, %arg3: memref<128x8xf32, #tpu.memory_space<vmem>>, %arg4: memref<8x8xf32, #tpu.memory_space<vmem>>) attributes {dimension_semantics = [#tpu.dimension_semantics<parallel>], iteration_bounds = array<i64: 1>, scalar_prefetch = 0 : i64, scratch_operands = 0 : i64, tpu.core_type = #tpu.core_type<tc>, window_params = [{transform_indices = @transform_0, window_bounds = array<i64: 8, 16>}, {pipeline_mode = #tpu.pipeline_mode<synchronous>, transform_indices = @transform_1, window_bounds = array<i64: 16, 128>}, {pipeline_mode = #tpu.pipeline_mode<synchronous>, transform_indices = @transform_2, window_bounds = array<i64: 128, 8>}, {transform_indices = @transform_3, window_bounds = array<i64: 8, 8>}]} {
    %c0 = arith.constant 0 : index
    %c0_0 = arith.constant 0 : index
    %0 = vector.load %arg1[%c0, %c0_0] : memref<8x16xf32, #tpu.memory_space<vmem>>, vector<8x16xf32>
    %c0_1 = arith.constant 0 : index
    %c0_2 = arith.constant 0 : index
    %1 = vector.load %arg2[%c0_1, %c0_2] : memref<16x128xf32, #tpu.memory_space<vmem>>, vector<16x128xf32>
    %cst = arith.constant dense<0.000000e+00> : vector<8x128xf32>
    %2 = tpu.matmul %0, %1, %cst {dimension_numbers = #tpu.dot_dimension_numbers<[1], [0], [0], [1], [0, 0, 1, 1], [], []>} : vector<8x16xf32>, vector<16x128xf32>, vector<8x128xf32> -> vector<8x128xf32>
    %cst_3 = arith.constant 0.000000e+00 : f32
    %3 = vector.broadcast %cst_3 : f32 to vector<8x128xf32>
    %4 = arith.maximumf %2, %3 : vector<8x128xf32>
    %c0_4 = arith.constant 0 : index
    %c0_5 = arith.constant 0 : index
    %5 = vector.load %arg3[%c0_4, %c0_5] : memref<128x8xf32, #tpu.memory_space<vmem>>, vector<128x8xf32>
    %cst_6 = arith.constant dense<0.000000e+00> : vector<8x8xf32>
    %6 = tpu.matmul %4, %5, %cst_6 {dimension_numbers = #tpu.dot_dimension_numbers<[1], [0], [0], [1], [0, 0, 1, 1], [], []>} : vector<8x128xf32>, vector<128x8xf32>, vector<8x8xf32> -> vector<8x8xf32>
    %7 = math.tanh %6 : vector<8x8xf32>
    %8 = tpu.iota {dimensions = array<i32: 1>} : vector<8x8xi32>
    %c4_i32 = arith.constant 4 : i32
    %9 = vector.broadcast %c4_i32 : i32 to vector<8x8xi32>
    %10 = arith.cmpi slt, %8, %9 : vector<8x8xi32>
    %11 = math.exp %7 : vector<8x8xf32>
    %cst_7 = arith.constant 0.000000e+00 : f32
    %12 = vector.broadcast %cst_7 : f32 to vector<8x8xf32>
    %13 = arith.select %10, %11, %12 : vector<8x8xi1>, vector<8x8xf32>
    %cst_8 = arith.constant dense<0.000000e+00> : vector<8xf32>
    %14 = vector.multi_reduction <add>, %13, %cst_8 [1] : vector<8x8xf32> to vector<8xf32>
    %15 = vector.shape_cast %14 : vector<8xf32> to vector<8x1xf32>
    %16 = tpu.reciprocal %15 {approx = true} : vector<8x1xf32> -> vector<8x1xf32>
    %17 = arith.mulf %15, %16 : vector<8x1xf32>
    %cst_9 = arith.constant 2.000000e+00 : f32
    %18 = vector.broadcast %cst_9 : f32 to vector<8x1xf32>
    %19 = arith.subf %18, %17 : vector<8x1xf32>
    %20 = arith.mulf %16, %19 : vector<8x1xf32>
    %21 = vector.broadcast %20 : vector<8x1xf32> to vector<8x8xf32>
    %22 = arith.mulf %13, %21 : vector<8x8xf32>
    %c0_10 = arith.constant 0 : index
    %c0_11 = arith.constant 0 : index
    %23 = vector.load %arg4[%c0_10, %c0_11] : memref<8x8xf32, #tpu.memory_space<vmem>>, vector<8x8xf32>
    tpu.vector_store %arg4[%c0_10, %c0_11], %22 {strides = array<i32>} : memref<8x8xf32, #tpu.memory_space<vmem>>, vector<8x8xf32>,
    return
  }
  func.func @transform_0(%arg0: i32) -> (i32, i32) {
    %c0_i32 = arith.constant 0 : i32
    %c0_i32_0 = arith.constant 0 : i32
    return %arg0, %c0_i32 : i32, i32
  }
  func.func @transform_1(%arg0: i32) -> (i32, i32) {
    %c0_i32 = arith.constant 0 : i32
    %c0_i32_0 = arith.constant 0 : i32
    %c0_i32_1 = arith.constant 0 : i32
    return %c0_i32, %c0_i32_0 : i32, i32
  }
  func.func @transform_2(%arg0: i32) -> (i32, i32) {
    %c0_i32 = arith.constant 0 : i32
    %c0_i32_0 = arith.constant 0 : i32
    %c0_i32_1 = arith.constant 0 : i32
    return %c0_i32, %c0_i32_0 : i32, i32
  }
  func.func @transform_3(%arg0: i32) -> (i32, i32) {
    %c0_i32 = arith.constant 0 : i32
    %c0_i32_0 = arith.constant 0 : i32
    return %arg0, %c0_i32 : i32, i32
  }
}

</mosaic_0001>

<bundles_post_ra>
// kernel: forward.1
= control target key start
LH: loop header
LB: loop body
LE: loop exit
PB: predicated region body
PF: predicated region fallthrough
CT: control target
= control target key end

     0   :  { %8 = vsyncpa [#allocation3], 0  ;;  %s152_s15 = smov [#allocation2]   ;;  %s153_s17 = smov 128   ;;  %s190_s0 = inlined_call_operand.vmem [shape: f32[8,16], index: 0, kind: input, shape index: {}]   ;;  %s191_s1 = inlined_call_operand.vmem [shape: f32[16,128], index: 1, kind: input, shape index: {}]   ;;  %s192_s2 = inlined_call_operand.hbm [shape: f32[128,8], index: 2, kind: input, shape index: {}]   ;;  %s193_s3 = inlined_call_operand.vmem [shape: f32[8,8], index: 3, kind: output, shape index: {}]  }
   0x1   :  { %s17_s14 = sshll.u32 %s192_s2, 4  ;;  %s19_s16 = sshll.u32 %s152_s15, 4  ;;  %s18_s14 = int_to_ptr.hbm [resolvable:$true] %s17_s14  ;;  %s20_s16 = int_to_ptr.vmem [resolvable:$true] %s19_s16 }
   0x2   :  { %s154_s18 = smov 8  }
   0x3   :  { %25 = dma.hbm_to_vmem [thread:$0]  %s18_s14, 2048, %s20_s16, [#allocation3], %s153_s17, %s153_s17, %s154_s18  }
   0x4   :  { %150 = dma.done.wait [#allocation3], 2048  }
   0x5   :  { %151 = vsyncadd [#allocation3], 4294965248  ;;  %v32_v0 = vld [vmem:[%s191_s1 + $0x8] sm:$0xff]  ;;  %v31_v1 = vld [vmem:[%s191_s1] sm:$0xff]  ;;  %vm33_vm0 = vcmask 130048   ;;  %v95_v22 = vlaneseq  ;;  %vm101_vm2 = vcmask 64512  }
   0x6   :  { %51 = vmatpush.msra.mxu0 %v32_v0  ;;  %v30_v2 = vld [vmem:[%s190_s0] sm:$0xff]  ;;  %v73_v3 = vld [vmem:[#allocation2 + $0x78] sm:$0xff]  ;;  %v72_v4 = vld [vmem:[#allocation2 + $0x70] sm:$0xff] }
   0x7   :  { %74 = vmatpush.msra.mxu1 %v73_v3  ;;  %v71_v5 = vld [vmem:[#allocation2 + $0x68] sm:$0xff]  ;;  %v70_v6 = vld [vmem:[#allocation2 + $0x60] sm:$0xff]  ;;  %v69_v7 = vld [vmem:[#allocation2 + $0x58] sm:$0xff]  ;;  %v96_v25 = vand.u32 127, %v95_v22 }
   0x8   :  { %52 = vmatpush.msra.mxu0 %v31_v1  ;;  %v68_v8 = vld [vmem:[#allocation2 + $0x50] sm:$0xff]  ;;  %v67_v9 = vld [vmem:[#allocation2 + $0x48] sm:$0xff]  ;;  %v66_v10 = vld [vmem:[#allocation2 + $0x40] sm:$0xff] }
   0x9   :  { %116 = vmatmul.msk.f32.vlgmr.msra.gmra.mxu0 %vm33_vm0, %v30_v2  ;;  %75 = vmatpush.msra.mxu1 %v72_v4  ;;  %v65_v11 = vld [vmem:[#allocation2 + $0x38] sm:$0xff]  ;;  %v64_v12 = vld [vmem:[#allocation2 + $0x30] sm:$0xff]  ;;  %v63_v13 = vld [vmem:[#allocation2 + $0x28] sm:$0xff]  ;;  %vm97_vm1 = vcmp.lt.s32.totalorder %v96_v25, 4 }
   0xa   :  { %v62_v14 = vld [vmem:[#allocation2 + $0x20] sm:$0xff]  ;;  %v61_v15 = vld [vmem:[#allocation2 + $0x18] sm:$0xff]  ;;  %v60_v16 = vld [vmem:[#allocation2 + $0x10] sm:$0xff] }
   0xb   :  { %76 = vmatpush.msra.mxu1 %v71_v5  ;;  %v59_v17 = vld [vmem:[#allocation2 + $0x8] sm:$0xff]  ;;  %v58_v18 = vld [vmem:[#allocation2] sm:$0xff] }
   0xd   :  { %77 = vmatpush.msra.mxu1 %v70_v6 }
   0xf   :  { %78 = vmatpush.msra.mxu1 %v69_v7 }
  0x11   :  { %79 = vmatpush.msra.mxu1 %v68_v8 }
  0x13   :  { %80 = vmatpush.msra.mxu1 %v67_v9 }
  0x15   :  { %81 = vmatpush.msra.mxu1 %v66_v10 }
  0x17   :  { %82 = vmatpush.msra.mxu1 %v65_v11 }
  0x19   :  { %83 = vmatpush.msra.mxu1 %v64_v12 }
  0x1b   :  { %84 = vmatpush.msra.mxu1 %v63_v13 }
  0x1d   :  { %85 = vmatpush.msra.mxu1 %v62_v14 }
  0x1f   :  { %86 = vmatpush.msra.mxu1 %v61_v15 }
  0x21   :  { %87 = vmatpush.msra.mxu1 %v60_v16 }
  0x23   :  { %88 = vmatpush.msra.mxu1 %v59_v17 }
  0x25   :  { %89 = vmatpush.msra.mxu1 %v58_v18 }
  0x86   :  { %v54_v19 = vpop.f32.mrf.mxu0 }
  0x87   :  { %v57_v20 = vmax.f32 %v54_v19, 0.0 }
  0x89   :  { %90 = vmatmul.f32.vlgmr.msra.gmra.mxu1 %v57_v20 }
 0x106   :  { %v91_v21 = vpop.f32.mrf.mxu1 }
 0x107   :  { %120 = vtanh.f32 %v91_v21 }
 0x10d   :  { %v121_v23 = vpop.eup %120 }
 0x10e   :  { %v98_v24 = vmul.f32 1.442695, %v121_v23 }
 0x110   :  { %122 = vpow2.f32 %v98_v24 }
 0x116   :  { %v123_v26 = vpop.eup %122 }
 0x117   :  { %v100_v27 = vsel %vm97_vm1, %v123_v26, 0.0 }
 0x118   :  { %v102_v28 = vsel %vm101_vm2, %v100_v27, 0.0 }
 0x119   :  { %103 = vadd.xlane.f32.xlu0 %v102_v28 }
 0x18c   :  { %v104_v29 = vpop.xlane.xlu0 %103 }
 0x18d   :  { %124 = vrcp.f32 %v104_v29 }
 0x193   :  { %v125_v30 = vpop.eup %124 }
 0x194   :  { %v106_v31 = vmul.f32 %v125_v30, %v104_v29 }
 0x196   :  { %v107_v32 = vsub.f32 2.0, %v106_v31 }
 0x198   :  { %v108_v33 = vmul.f32 %v125_v30, %v107_v32 }
 0x19a   :  { %v109_v34 = vmul.f32 %v108_v33, %v100_v27 }
 0x19c   :  { %110 = vst.msk [vmem:[%s193_s3] sm:$0xff] %vm101_vm2, %v109_v34 }
 0x19d   :  { %115 = vsyncpa [#allocation3], 1 }

</bundles_post_ra>
